<compile_context>
chip_gen: v6e
topology: v6e:2x2x1
jax: 0.10.0
libtpu: 0.0.40
codegen_flags: <defaults>
</compile_context>

<pallas_src>
import math
import jax
import jax.numpy as jnp
from jax.experimental import pallas as pl
from jax.experimental.pallas import tpu as pltpu

_MIB = 1024 * 1024


def _round_up(x, m):
    return ((x + m - 1) // m) * m


def _sublane(dtype):
    return 16 if jnp.dtype(dtype).itemsize == 2 else 8


# ----------------------------- Pallas kernels ------------------------------

def _skip_linear_kernel(old_ref, w_ref, new_ref, out_ref):
    """out = old @ W + new   (irreps_in != irreps_out path)."""
    proj = jnp.dot(old_ref[...], w_ref[...], preferred_element_type=jnp.float32)
    out_ref[...] = (proj + new_ref[...].astype(jnp.float32)).astype(out_ref.dtype)


def _skip_add_kernel(old_ref, new_ref, out_ref):
    """out = old + new       (irreps_in == irreps_out path)."""
    out_ref[...] = (old_ref[...] + new_ref[...]).astype(out_ref.dtype)


# --------------------------- irreps / parameters ----------------------------

def irreps_dim(irreps):
    """irreps: list of (mul, (l, parity)) -> total flattened dimension."""
    return sum(mul * (2 * l + 1) for mul, (l, _p) in irreps)


def make_e3nn_linear_weight(key, irreps_in, irreps_out, dtype=jnp.float32):
    """Dense (din, dout) matrix equivalent to e3nn o3.Linear.

    For each (l, p) present in both irreps, draw (mul_in, mul_out) ~ N(0,1),
    scale by 1/sqrt(mul_in), and replicate across the (2l+1) components
    block-diagonally.  Non-matching inputs are dropped; non-matching outputs
    stay zero.  Built once at setup time, already in the compute dtype.
    """
    # TODO(synk): e3nn's default path normalization uses the *total* fan-in when
    # several input irreps share the same (l, parity); this per-path 1/sqrt(mul_in)
    # diverges from e3nn in that (setup-time) case.
    din, dout = irreps_dim(irreps_in), irreps_dim(irreps_out)
    W = jnp.zeros((din, dout), dtype=dtype)

    def offsets(irreps):
        offs, o = [], 0
        for mul, (l, _p) in irreps:
            offs.append(o)
            o += mul * (2 * l + 1)
        return offs

    in_offs, out_offs = offsets(irreps_in), offsets(irreps_out)

    for i_in, (mul_in, (l_in, p_in)) in enumerate(irreps_in):
        for i_out, (mul_out, (l_out, p_out)) in enumerate(irreps_out):
            if (l_in, p_in) != (l_out, p_out):
                continue
            key, sub = jax.random.split(key)
            w = jax.random.normal(sub, (mul_in, mul_out), dtype=dtype)
            w = w / math.sqrt(mul_in)
            d = 2 * l_in + 1
            block = jnp.einsum("uv,ij->uivj", w, jnp.eye(d, dtype=dtype))
            block = block.reshape(mul_in * d, mul_out * d)
            W = W.at[in_offs[i_in]:in_offs[i_in] + mul_in * d,
                     out_offs[i_out]:out_offs[i_out] + mul_out * d].set(block)
    return W


# ----------------------------- tiling helpers -------------------------------

def _choose_tile_rows(n_rows, bytes_per_row, resident_bytes, sublane,
                      tile_budget=24 * _MIB, max_tile=2048):
    """Row-tile size: big enough to amortize ~0.35 us/step overhead, small
    enough that double-buffered row tiles plus the resident weight stay well
    under every generation's per-core VMEM (v5e 16 MiB scoped default, v7x
    64 MiB physical per TC)."""
    budget = max(tile_budget - 2 * resident_bytes, 2 * _MIB)
    tile = budget // max(2 * bytes_per_row, 1)            # x2: double buffering
    tile = max(sublane, min(max_tile, (tile // sublane) * sublane))
    if n_rows <= tile:
        tile = _round_up(max(n_rows, 1), sublane)
    return tile


def _vmem_limit(need_bytes):
    # Generous headroom; never below 32 MiB, never above 60 MiB (v7x per-TC cap).
    return int(min(60 * _MIB, max(need_bytes + 4 * _MIB, 32 * _MIB)))


# ------------------------------- wrapper ------------------------------------

def skip_connection(old, new, irreps_in, irreps_out, W=None):
    """Pallas implementation of SkipConnection.forward(old, new)."""
    N = old.shape[0]
    din, dout = irreps_dim(irreps_in), irreps_dim(irreps_out)
    assert old.shape == (N, din) and new.shape == (N, dout)

    out_dtype = jnp.result_type(old.dtype, new.dtype)
    itemsize = jnp.dtype(out_dtype).itemsize
    sub = _sublane(out_dtype)

    if list(irreps_in) == list(irreps_out):
        # ------------------- pure residual add path -------------------------
        # Lane density via a free row-major reshape (no padding, no extra HBM
        # traffic); fall back to full-extent feature blocks when not divisible.
        total = N * dout
        if dout > 0 and total % 128 == 0:
            rows, feat = total // 128, 128
            a = old.reshape(rows, feat)
            b = new.reshape(rows, feat)
        else:
            rows, feat = N, dout
            a, b = old, new

        bytes_per_row = 3 * feat * itemsize
        tile_r = _choose_tile_rows(rows, bytes_per_row, 0, sub)
        need = 3 * 2 * tile_r * feat * itemsize
        out = pl.pallas_call(
            _skip_add_kernel,
            out_shape=jax.ShapeDtypeStruct((rows, feat), out_dtype),
            grid=(pl.cdiv(rows, tile_r),),
            in_specs=[pl.BlockSpec((tile_r, feat), lambda i: (i, 0)),
                      pl.BlockSpec((tile_r, feat), lambda i: (i, 0))],
            out_specs=pl.BlockSpec((tile_r, feat), lambda i: (i, 0)),
            compiler_params=pltpu.CompilerParams(
                dimension_semantics=("parallel",),
                vmem_limit_bytes=_vmem_limit(need)),
            cost_estimate=pl.CostEstimate(
                flops=N * dout, transcendentals=0,
                bytes_accessed=3 * N * dout * itemsize),
        )(a, b)
        return out.reshape(N, dout)

    # ----------------------- linear projection path -------------------------
    assert W is not None and W.shape == (din, dout)
    if W.dtype != old.dtype:                      # normally a no-op: W is built
        W = W.astype(old.dtype)                   # in the compute dtype at setup

    w_bytes = din * dout * jnp.dtype(W.dtype).itemsize
    bytes_per_row = (din + 2 * dout) * itemsize
    tile_n = _choose_tile_rows(N, bytes_per_row, w_bytes, sub)
    need = 2 * w_bytes + 2 * tile_n * bytes_per_row

    out = pl.pallas_call(
        _skip_linear_kernel,
        out_shape=jax.ShapeDtypeStruct((N, dout), out_dtype),
        grid=(pl.cdiv(N, tile_n),),
        in_specs=[pl.BlockSpec((tile_n, din), lambda i: (i, 0)),
                  pl.BlockSpec((din, dout), lambda i: (0, 0)),   # W stays resident
                  pl.BlockSpec((tile_n, dout), lambda i: (i, 0))],
        out_specs=pl.BlockSpec((tile_n, dout), lambda i: (i, 0)),
        compiler_params=pltpu.CompilerParams(
            dimension_semantics=("parallel",),
            vmem_limit_bytes=_vmem_limit(need)),
        cost_estimate=pl.CostEstimate(
            flops=2 * N * din * dout, transcendentals=0,
            bytes_accessed=itemsize * (N * din + 2 * N * dout) + w_bytes),
    )(old, W, new)
    return out


# -------------------------------- main --------------------------------------

if __name__ == "__main__":
    # irreps: list of (multiplicity, (l, parity))
    irreps_in = [(8, (0, 1)), (4, (1, -1))]    # "8x0e + 4x1o"  -> dim 20
    irreps_out = [(4, (0, 1)), (4, (1, -1))]   # "4x0e + 4x1o"  -> dim 16
    N = 100                                     # deliberately ragged vs. 8-row tiles

    key = jax.random.PRNGKey(0)
    k_old, k_new, k_w = jax.random.split(key, 3)

    old = jax.random.normal(k_old, (N, irreps_dim(irreps_in)), dtype=jnp.float32)
    new = jax.random.normal(k_new, (N, irreps_dim(irreps_out)), dtype=jnp.float32)
    W = make_e3nn_linear_weight(k_w, irreps_in, irreps_out)

    # 1) projection + residual path (irreps differ), ragged last row tile
    out = jax.block_until_ready(skip_connection(old, new, irreps_in, irreps_out, W))
    ref = old @ W + new
    assert out.shape == new.shape
    assert jnp.allclose(out, ref, atol=1e-5, rtol=1e-5), "linear path mismatch"

    # 2) identity-irreps path, non-128-divisible total -> full-extent add blocks
    out_same = jax.block_until_ready(skip_connection(new, new, irreps_out, irreps_out))
    assert jnp.allclose(out_same, new + new, atol=1e-6), "add path mismatch"

    # 3) identity-irreps path, 64*16=1024 -> lane-dense reshape add path
    old2, new2 = old[:64, :16], new[:64, :]
    out2 = jax.block_until_ready(skip_connection(old2, new2, irreps_out, irreps_out))
    assert jnp.allclose(out2, old2 + new2, atol=1e-6), "lane-dense add mismatch"

    print("KERNEL_OK")
</pallas_src>

<mosaic_0001>
module attributes {stable_mosaic.version = 11 : i64} {
  func.func @_skip_linear_kernel(%arg0: i32, %arg1: memref<104x20xf32, #tpu.memory_space<vmem>>, %arg2: memref<20x16xf32, #tpu.memory_space<vmem>>, %arg3: memref<104x16xf32, #tpu.memory_space<vmem>>, %arg4: memref<104x16xf32, #tpu.memory_space<vmem>>) attributes {dimension_semantics = [#tpu.dimension_semantics<parallel>], iteration_bounds = array<i64: 1>, scalar_prefetch = 0 : i64, scratch_operands = 0 : i64, tpu.core_type = #tpu.core_type<tc>, window_params = [{transform_indices = @transform_0, window_bounds = array<i64: 104, 20>}, {pipeline_mode = #tpu.pipeline_mode<synchronous>, transform_indices = @transform_1, window_bounds = array<i64: 20, 16>}, {transform_indices = @transform_2, window_bounds = array<i64: 104, 16>}, {transform_indices = @transform_3, window_bounds = array<i64: 104, 16>}]} {
    %c0 = arith.constant 0 : index
    %c0_0 = arith.constant 0 : index
    %0 = vector.load %arg1[%c0, %c0_0] : memref<104x20xf32, #tpu.memory_space<vmem>>, vector<104x20xf32>
    %c0_1 = arith.constant 0 : index
    %c0_2 = arith.constant 0 : index
    %1 = vector.load %arg2[%c0_1, %c0_2] : memref<20x16xf32, #tpu.memory_space<vmem>>, vector<20x16xf32>
    %cst = arith.constant dense<0.000000e+00> : vector<104x16xf32>
    %2 = tpu.matmul %0, %1, %cst {dimension_numbers = #tpu.dot_dimension_numbers<[1], [0], [0], [1], [0, 0, 1, 1], [], []>} : vector<104x20xf32>, vector<20x16xf32>, vector<104x16xf32> -> vector<104x16xf32>
    %c0_3 = arith.constant 0 : index
    %c0_4 = arith.constant 0 : index
    %3 = vector.load %arg3[%c0_3, %c0_4] : memref<104x16xf32, #tpu.memory_space<vmem>>, vector<104x16xf32>
    %4 = arith.addf %2, %3 : vector<104x16xf32>
    %c0_5 = arith.constant 0 : index
    %c0_6 = arith.constant 0 : index
    %5 = vector.load %arg4[%c0_5, %c0_6] : memref<104x16xf32, #tpu.memory_space<vmem>>, vector<104x16xf32>
    tpu.vector_store %arg4[%c0_5, %c0_6], %4 {strides = array<i32>} : memref<104x16xf32, #tpu.memory_space<vmem>>, vector<104x16xf32>,
    return
  }
  func.func @transform_0(%arg0: i32) -> (i32, i32) {
    %c0_i32 = arith.constant 0 : i32
    %c0_i32_0 = arith.constant 0 : i32
    return %arg0, %c0_i32 : i32, i32
  }
  func.func @transform_1(%arg0: i32) -> (i32, i32) {
    %c0_i32 = arith.constant 0 : i32
    %c0_i32_0 = arith.constant 0 : i32
    %c0_i32_1 = arith.constant 0 : i32
    return %c0_i32, %c0_i32_0 : i32, i32
  }
  func.func @transform_2(%arg0: i32) -> (i32, i32) {
    %c0_i32 = arith.constant 0 : i32
    %c0_i32_0 = arith.constant 0 : i32
    return %arg0, %c0_i32 : i32, i32
  }
  func.func @transform_3(%arg0: i32) -> (i32, i32) {
    %c0_i32 = arith.constant 0 : i32
    %c0_i32_0 = arith.constant 0 : i32
    return %arg0, %c0_i32 : i32, i32
  }
}

</mosaic_0001>

<bundles_post_ra>
// kernel: tpu_custom_call.1
= control target key start
LH: loop header
LB: loop body
LE: loop exit
PB: predicated region body
PF: predicated region fallthrough
CT: control target
= control target key end

     0   :  { %vm83_vm0 = vcmask 1043456   ;;  %v318_v0 = vmov 0.0   ;;  %vm43_vm1 = vcmask 162816   ;;  %vm319_vm2 = vmmov 0   ;;  %s505_s1 = inlined_call_operand.vmem [shape: f32[20,16], index: 1, kind: input, shape index: {}]   ;;  %s506_s0 = inlined_call_operand.vmem [shape: f32[100,20], index: 0, kind: input, shape index: {}]   ;;  %s507_s2 = inlined_call_operand.vmem [shape: f32[100,16], index: 2, kind: input, shape index: {}]   ;;  %s508_s3 = inlined_call_operand.vmem [shape: f32[100,16], index: 3, kind: output, shape index: {}]  }
   0x1   :  { %265 = vmatprep.subr.mxu0 %v318_v0  ;;  %v29_v1 = vld [vmem:[%s505_s1 + $0x10] sm:$0xf]  ;;  %310 = vmatprep.subr.mxu1 %v318_v0  ;;  %v28_v2 = vld [vmem:[%s505_s1 + $0x8] sm:$0xff]  ;;  %v27_v3 = vld [vmem:[%s505_s1] sm:$0xff]  ;;  %vm217_vm3 = vcmask 130048  }
   0x2   :  { %266 = vmatpush3.msk.msra.mxu0 %vm83_vm0, %v29_v1  ;;  %313 = vmatpush3.msk.msra.mxu1 %vm83_vm0, %v29_v1  ;;  %v14_v4 = vld [vmem:[%s506_s0] sm:$0xff]  ;;  %v21_v5 = vld [vmem:[%s506_s0 + $0x38] sm:$0xff]  ;;  %v15_v6 = vld [vmem:[%s506_s0 + $0x8] sm:$0xff] }
   0x3   :  { %267 = vmatprep.subr.mxu0 %v318_v0  ;;  %311 = vmatprep.subr.mxu1 %v318_v0  ;;  %v22_v7 = vld [vmem:[%s506_s0 + $0x40] sm:$0xff]  ;;  %v16_v8 = vld [vmem:[%s506_s0 + $0x10] sm:$0xff]  ;;  %v23_v9 = vld [vmem:[%s506_s0 + $0x48] sm:$0xff] }
   0x4   :  { %268 = vmatpush3.msra.mxu0 %v28_v2  ;;  %314 = vmatpush3.msra.mxu1 %v28_v2  ;;  %v17_v10 = vld [vmem:[%s506_s0 + $0x18] sm:$0xff]  ;;  %v24_v11 = vld [vmem:[%s506_s0 + $0x50] sm:$0xff]  ;;  %v18_v12 = vld [vmem:[%s506_s0 + $0x20] sm:$0xff] }
   0x5   :  { %269 = vmatprep.subr.mxu0 %v318_v0  ;;  %271 = vmatprep.mubr.msk.f32.mxu0 %vm319_vm2, %v318_v0  ;;  %v25_v13 = vld [vmem:[%s506_s0 + $0x58] sm:$0xff]  ;;  %v19_v14 = vld [vmem:[%s506_s0 + $0x28] sm:$0xff]  ;;  %v26_v15 = vld [vmem:[%s506_s0 + $0x60] sm:$0xff] }
   0x6   :  { %270 = vmatpush3.msra.mxu0 %v27_v3  ;;  %312 = vmatprep.subr.mxu1 %v318_v0  ;;  %v20_v16 = vld [vmem:[%s506_s0 + $0x30] sm:$0xff]  ;;  %v30_v17 = vld [vmem:[%s507_s2] sm:$0xff]  ;;  %v37_v19 = vld [vmem:[%s507_s2 + $0x38] sm:$0xff] }
   0x7   :  { %272 = vmatmul.mubr.msk.f32.vlgmr.msra.gmra.mxu0 %vm43_vm1, %v14_v4  ;;  %315 = vmatpush3.msra.mxu1 %v27_v3  ;;  %v31_v23 = vld [vmem:[%s507_s2 + $0x8] sm:$0xff]  ;;  %v38_v27 = vld [vmem:[%s507_s2 + $0x40] sm:$0xff]  ;;  %v32_v31 = vld [vmem:[%s507_s2 + $0x10] sm:$0xff] }
   0x8   :  { %292 = vmatprep.mubr.msk.f32.mxu1 %vm319_vm2, %v318_v0  ;;  %274 = vmatprep.mubr.msk.f32.mxu0 %vm319_vm2, %v318_v0  ;;  %v39_v35 = vld [vmem:[%s507_s2 + $0x48] sm:$0xff]  ;;  %v33_v39 = vld [vmem:[%s507_s2 + $0x18] sm:$0xff]  ;;  %v40_v43 = vld [vmem:[%s507_s2 + $0x50] sm:$0xff] }
   0x9   :  { %293 = vmatmul.mubr.msk.f32.vlgmr.msra.gmra.mxu1 %vm43_vm1, %v21_v5  ;;  %v34_v47 = vld [vmem:[%s507_s2 + $0x20] sm:$0xff]  ;;  %v41_v51 = vld [vmem:[%s507_s2 + $0x58] sm:$0xff]  ;;  %v35_v55 = vld [vmem:[%s507_s2 + $0x28] sm:$0xff] }
   0xa   :  { %295 = vmatprep.mubr.msk.f32.mxu1 %vm319_vm2, %v318_v0  ;;  %v42_v59 = vld [vmem:[%s507_s2 + $0x60] sm:$0xff]  ;;  %v36_v63 = vld [vmem:[%s507_s2 + $0x30] sm:$0xff] }
   0xb   :  { %275 = vmatmul.mubr.msk.f32.gmra.mxu0 %vm43_vm1, %v15_v6 }
   0xc   :  { %277 = vmatprep.mubr.msk.f32.mxu0 %vm319_vm2, %v318_v0 }
   0xd   :  { %296 = vmatmul.mubr.msk.f32.gmra.mxu1 %vm43_vm1, %v22_v7 }
   0xe   :  { %298 = vmatprep.mubr.msk.f32.mxu1 %vm319_vm2, %v318_v0 }
   0xf   :  { %278 = vmatmul.mubr.msk.f32.gmra.mxu0 %vm43_vm1, %v16_v8 }
  0x10   :  { %280 = vmatprep.mubr.msk.f32.mxu0 %vm319_vm2, %v318_v0 }
  0x11   :  { %299 = vmatmul.mubr.msk.f32.gmra.mxu1 %vm43_vm1, %v23_v9 }
  0x12   :  { %301 = vmatprep.mubr.msk.f32.mxu1 %vm319_vm2, %v318_v0 }
  0x13   :  { %281 = vmatmul.mubr.msk.f32.gmra.mxu0 %vm43_vm1, %v17_v10 }
  0x14   :  { %283 = vmatprep.mubr.msk.f32.mxu0 %vm319_vm2, %v318_v0 }
  0x15   :  { %302 = vmatmul.mubr.msk.f32.gmra.mxu1 %vm43_vm1, %v24_v11 }
  0x16   :  { %304 = vmatprep.mubr.msk.f32.mxu1 %vm319_vm2, %v318_v0 }
  0x17   :  { %284 = vmatmul.mubr.msk.f32.gmra.mxu0 %vm43_vm1, %v18_v12 }
  0x18   :  { %286 = vmatprep.mubr.msk.f32.mxu0 %vm319_vm2, %v318_v0 }
  0x19   :  { %305 = vmatmul.mubr.msk.f32.gmra.mxu1 %vm43_vm1, %v25_v13 }
  0x1a   :  { %307 = vmatprep.mubr.msk.f32.mxu1 %vm319_vm2, %v318_v0 }
  0x1b   :  { %287 = vmatmul.mubr.msk.f32.gmra.mxu0 %vm43_vm1, %v19_v14 }
  0x1c   :  { %289 = vmatprep.mubr.msk.f32.mxu0 %vm319_vm2, %v318_v0 }
  0x1d   :  { %308 = vmatmul.mubr.msk.f32.gmra.mxu1 %vm43_vm1, %v26_v15 }
  0x1f   :  { %290 = vmatmul.mubr.msk.f32.gmra.mxu0 %vm43_vm1, %v20_v16 }
  0xc7   :  { %v153_v18 = vpop.f32.mrf.mxu0 }
  0xc8   :  { %v154_v20 = vadd.f32 %v153_v18, %v30_v17 }
  0xc9   :  { %v273_v21 = vpop.f32.mrf.mxu0  ;;  %v188_v22 = vpop.f32.mrf.mxu1 }
  0xca   :  { %218 = vst.msk [vmem:[%s508_s3] sm:$0xff] %vm217_vm3, %v154_v20  ;;  %v189_v24 = vadd.f32 %v188_v22, %v37_v19 }
  0xcb   :  { %v158_v25 = vpop.f32.mrf.mxu0  ;;  %v294_v26 = vpop.f32.mrf.mxu1 }
  0xcc   :  { %225 = vst.msk [vmem:[%s508_s3 + $0x38] sm:$0xff] %vm217_vm3, %v189_v24  ;;  %v159_v28 = vadd.f32 %v158_v25, %v31_v23 }
  0xcd   :  { %v276_v29 = vpop.f32.mrf.mxu0  ;;  %v193_v30 = vpop.f32.mrf.mxu1 }
  0xce   :  { %219 = vst.msk [vmem:[%s508_s3 + $0x8] sm:$0xff] %vm217_vm3, %v159_v28  ;;  %v194_v32 = vadd.f32 %v193_v30, %v38_v27 }
  0xcf   :  { %v163_v33 = vpop.f32.mrf.mxu0  ;;  %v297_v34 = vpop.f32.mrf.mxu1 }
  0xd0   :  { %226 = vst.msk [vmem:[%s508_s3 + $0x40] sm:$0xff] %vm217_vm3, %v194_v32  ;;  %v164_v36 = vadd.f32 %v163_v33, %v32_v31 }
  0xd1   :  { %v279_v37 = vpop.f32.mrf.mxu0  ;;  %v198_v38 = vpop.f32.mrf.mxu1 }
  0xd2   :  { %220 = vst.msk [vmem:[%s508_s3 + $0x10] sm:$0xff] %vm217_vm3, %v164_v36  ;;  %v199_v40 = vadd.f32 %v198_v38, %v39_v35 }
  0xd3   :  { %v168_v41 = vpop.f32.mrf.mxu0  ;;  %v300_v42 = vpop.f32.mrf.mxu1 }
  0xd4   :  { %227 = vst.msk [vmem:[%s508_s3 + $0x48] sm:$0xff] %vm217_vm3, %v199_v40  ;;  %v169_v44 = vadd.f32 %v168_v41, %v33_v39 }
  0xd5   :  { %v282_v45 = vpop.f32.mrf.mxu0  ;;  %v203_v46 = vpop.f32.mrf.mxu1 }
  0xd6   :  { %221 = vst.msk [vmem:[%s508_s3 + $0x18] sm:$0xff] %vm217_vm3, %v169_v44  ;;  %v204_v48 = vadd.f32 %v203_v46, %v40_v43 }
  0xd7   :  { %v173_v49 = vpop.f32.mrf.mxu0  ;;  %v303_v50 = vpop.f32.mrf.mxu1 }
  0xd8   :  { %228 = vst.msk [vmem:[%s508_s3 + $0x50] sm:$0xff] %vm217_vm3, %v204_v48  ;;  %v174_v52 = vadd.f32 %v173_v49, %v34_v47 }
  0xd9   :  { %v285_v53 = vpop.f32.mrf.mxu0  ;;  %v208_v54 = vpop.f32.mrf.mxu1 }
  0xda   :  { %222 = vst.msk [vmem:[%s508_s3 + $0x20] sm:$0xff] %vm217_vm3, %v174_v52  ;;  %v209_v56 = vadd.f32 %v208_v54, %v41_v51 }
  0xdb   :  { %v178_v57 = vpop.f32.mrf.mxu0  ;;  %v306_v58 = vpop.f32.mrf.mxu1 }
  0xdc   :  { %229 = vst.msk [vmem:[%s508_s3 + $0x58] sm:$0xff] %vm217_vm3, %v209_v56  ;;  %v179_v60 = vadd.f32 %v178_v57, %v35_v55 }
  0xdd   :  { %v288_v61 = vpop.f32.mrf.mxu0  ;;  %v213_v62 = vpop.f32.mrf.mxu1 }
  0xde   :  { %223 = vst.msk [vmem:[%s508_s3 + $0x28] sm:$0xff] %vm217_vm3, %v179_v60  ;;  %v214_v0 = vadd.f32 %v213_v62, %v42_v59 }
  0xdf   :  { %v183_v1 = vpop.f32.mrf.mxu0  ;;  %v309_v2 = vpop.f32.mrf.mxu1 }
  0xe0   :  { %230 = vst.msk [vmem:[%s508_s3 + $0x60] sm:$0xff] %vm217_vm3, %v214_v0  ;;  %v184_v3 = vadd.f32 %v183_v1, %v36_v63 }
  0xe1   :  { %v291_v4 = vpop.f32.mrf.mxu0 }
  0xe2   :  { %224 = vst.msk [vmem:[%s508_s3 + $0x30] sm:$0xff] %vm217_vm3, %v184_v3 }

</bundles_post_ra>
